<compile_context>
chip_gen: v7x
topology: tpu7x:2x2x1
jax: 0.10.0
libtpu: 0.0.40
codegen_flags: <defaults>
</compile_context>

<pallas_src>
import functools

import numpy as np
import jax
import jax.numpy as jnp
from jax import lax
from jax.experimental import pallas as pl
from jax.experimental.pallas import tpu as pltpu

BN_EPS = 1e-5
VMEM_LIMIT = 48 * 1024 * 1024


def _rup(x, m):
    return (x + m - 1) // m * m


# ---------------------------------------------------------------------------
# Generic fused matmul:  out = prelu(scale * (A @ B) + bias, alpha)
# Grid = (M tiles, K tiles); full N per block, f32 accumulator scratch.
# ---------------------------------------------------------------------------
def _mm_kernel(a_ref, b_ref, s_ref, c_ref, al_ref, o_ref, acc_ref):
    @pl.when(pl.program_id(1) == 0)
    def _():
        acc_ref[...] = jnp.zeros_like(acc_ref)

    acc_ref[...] += jnp.dot(a_ref[...], b_ref[...],
                            preferred_element_type=jnp.float32)

    @pl.when(pl.program_id(1) == pl.num_programs(1) - 1)
    def _():
        y = acc_ref[...] * s_ref[...] + c_ref[...]
        y = jnp.where(y >= 0.0, y, al_ref[...] * y)
        o_ref[...] = y.astype(o_ref.dtype)


@functools.lru_cache(maxsize=None)
def _mm_call(M, K, N, tm, tk, out_dtype):
    f = pl.pallas_call(
        _mm_kernel,
        out_shape=jax.ShapeDtypeStruct((M, N), out_dtype),
        grid_spec=pltpu.PrefetchScalarGridSpec(
            num_scalar_prefetch=0,
            grid=(M // tm, K // tk),
            in_specs=[pl.BlockSpec((tm, tk), lambda i, k: (i, k)),
                      pl.BlockSpec((tk, N), lambda i, k: (k, 0)),
                      pl.BlockSpec((1, N), lambda i, k: (0, 0)),
                      pl.BlockSpec((1, N), lambda i, k: (0, 0)),
                      pl.BlockSpec((1, N), lambda i, k: (0, 0))],
            out_specs=pl.BlockSpec((tm, N), lambda i, k: (i, 0)),
            scratch_shapes=[pltpu.VMEM((tm, N), jnp.float32)]),
        compiler_params=pltpu.CompilerParams(
            dimension_semantics=("parallel", "arbitrary"),
            vmem_limit_bytes=VMEM_LIMIT),
    )
    return jax.jit(f)


def fused_matmul(a, b, scale=None, bias=None, alpha=None,
                 out_dtype=jnp.float32, tm=None, tk=None):
    M, K = a.shape
    K2, N = b.shape
    assert K == K2
    Mp, Kp = _rup(M, 8), _rup(K, 8)
    if Kp != K:
        a = jnp.pad(a, ((0, 0), (0, Kp - K)))
        b = jnp.pad(b, ((0, Kp - K), (0, 0)))
    if Mp != M:
        a = jnp.pad(a, ((0, Mp - M), (0, 0)))
    scale = jnp.ones((1, N), jnp.float32) if scale is None else scale
    bias = jnp.zeros((1, N), jnp.float32) if bias is None else bias
    alpha = jnp.ones((1, N), jnp.float32) if alpha is None else alpha
    tm = Mp if tm is None else tm
    tk = Kp if tk is None else tk
    assert Mp % tm == 0 and Kp % tk == 0
    out = _mm_call(Mp, Kp, N, tm, tk, out_dtype)(a, b, scale, bias, alpha)
    return out[:M] if Mp != M else out


# ---------------------------------------------------------------------------
# Fused 3x3 conv kernel (per-image VMEM-resident input + weight).
# ---------------------------------------------------------------------------
def _conv_kernel(x_ref, w_ref, s_ref, c_ref, al_ref, o_ref, *,
                 kh, kw, ce, oh, ow, owp, row_stride, out_pad):
    co = o_ref.shape[-1]
    scale = s_ref[...]
    bias = c_ref[...]
    alpha = al_ref[...]
    if out_pad:
        o_ref[...] = jnp.zeros(o_ref.shape, o_ref.dtype)

    def row_body(r, carry):
        acc = jnp.zeros((owp, co), jnp.float32)
        for dh in range(kh):
            h = row_stride * r + dh
            for dw in range(kw):
                t = dh * kw + dw
                patch = x_ref[0, h, dw:dw + owp, :]           # (owp, ce) bf16
                wt = w_ref[t * ce:(t + 1) * ce, :]            # (ce, co) bf16
                acc = acc + jnp.dot(patch, wt,
                                    preferred_element_type=jnp.float32)
        y = acc * scale + bias
        y = jnp.where(y >= 0.0, y, alpha * y)                 # PReLU / identity
        y = y.astype(o_ref.dtype)
        if out_pad:
            o_ref[0, r + 1, 1:1 + ow, :] = y[:ow]
        else:
            o_ref[0, r, :, :] = y[:ow]
        return carry

    lax.fori_loop(0, oh, row_body, 0)


@functools.lru_cache(maxsize=None)
def _conv_call(B, hp, wp, ce, co, kh, kw, oh, ow, owp, row_stride,
               out_pad, out_h, out_w):
    kernel = functools.partial(
        _conv_kernel, kh=kh, kw=kw, ce=ce, oh=oh, ow=ow, owp=owp,
        row_stride=row_stride, out_pad=out_pad)
    f = pl.pallas_call(
        kernel,
        out_shape=jax.ShapeDtypeStruct((B, out_h, out_w, co), jnp.bfloat16),
        grid_spec=pltpu.PrefetchScalarGridSpec(
            num_scalar_prefetch=0,
            grid=(B,),
            in_specs=[pl.BlockSpec((1, hp, wp, ce), lambda b: (b, 0, 0, 0)),
                      pl.BlockSpec((kh * kw * ce, co), lambda b: (0, 0)),
                      pl.BlockSpec((1, co), lambda b: (0, 0)),
                      pl.BlockSpec((1, co), lambda b: (0, 0)),
                      pl.BlockSpec((1, co), lambda b: (0, 0))],
            out_specs=pl.BlockSpec((1, out_h, out_w, co),
                                   lambda b: (b, 0, 0, 0))),
        compiler_params=pltpu.CompilerParams(
            dimension_semantics=("parallel",),
            vmem_limit_bytes=VMEM_LIMIT),
    )
    return jax.jit(f)


def conv3x3(xpad, w_mat, scale, bias, alpha, *, kh, kw, ce, oh, ow,
            row_stride, out_pad_shape=None):
    B, hp, wp, ce_in = xpad.shape
    assert ce_in == ce
    co = w_mat.shape[1]
    owp = _rup(ow, 8)
    if out_pad_shape is None:
        out_pad, out_h, out_w = False, oh, ow
    else:
        out_pad = True
        out_h, out_w = out_pad_shape
    return _conv_call(B, hp, wp, ce, co, kh, kw, oh, ow, owp, row_stride,
                      out_pad, out_h, out_w)(xpad, w_mat, scale, bias, alpha)


# ---------------------------------------------------------------------------
# Fused SE module (GAP -> fc1 -> ReLU -> fc2 -> sigmoid gate) + residual add.
# ---------------------------------------------------------------------------
def _se_kernel(x_ref, sc_ref, w1_ref, w2_ref, o_ref, *, inv_hw):
    x = x_ref[0].astype(jnp.float32)                          # (HW, C)
    pooled = jnp.sum(x, axis=0, keepdims=True) * inv_hw       # (1, C)
    p8 = jnp.broadcast_to(pooled, (8, pooled.shape[1]))
    h = jnp.maximum(jnp.dot(p8, w1_ref[...],
                            preferred_element_type=jnp.float32), 0.0)
    s = jnp.dot(h, w2_ref[...], preferred_element_type=jnp.float32)
    gate = jax.nn.sigmoid(s[0:1, :])                          # (1, C)
    o_ref[0] = (x * gate + sc_ref[0].astype(jnp.float32)).astype(o_ref.dtype)


@functools.lru_cache(maxsize=None)
def _se_call(B, HW, C):
    kernel = functools.partial(_se_kernel, inv_hw=1.0 / HW)
    f = pl.pallas_call(
        kernel,
        out_shape=jax.ShapeDtypeStruct((B, HW, C), jnp.bfloat16),
        grid_spec=pltpu.PrefetchScalarGridSpec(
            num_scalar_prefetch=0,
            grid=(B,),
            in_specs=[pl.BlockSpec((1, HW, C), lambda b: (b, 0, 0)),
                      pl.BlockSpec((1, HW, C), lambda b: (b, 0, 0)),
                      pl.BlockSpec((C, 128), lambda b: (0, 0)),
                      pl.BlockSpec((128, C), lambda b: (0, 0))],
            out_specs=pl.BlockSpec((1, HW, C), lambda b: (b, 0, 0))),
        compiler_params=pltpu.CompilerParams(
            dimension_semantics=("parallel",),
            vmem_limit_bytes=VMEM_LIMIT),
    )
    return jax.jit(f)


def se_residual(res, shortcut, fc1, fc2):
    B, H, W, C = res.shape
    out = _se_call(B, H * W, C)(res.reshape(B, H * W, C),
                                shortcut.reshape(B, H * W, C), fc1, fc2)
    return out.reshape(B, H, W, C)


# ---------------------------------------------------------------------------
# Cosine similarity (scale invariant, so the reference l2_norm can be skipped).
# ---------------------------------------------------------------------------
def _cosine_kernel(a_ref, b_ref, o_ref):
    a = a_ref[...]
    b = b_ref[...]
    dot = jnp.sum(a * b, axis=-1, keepdims=True)
    na = jnp.sqrt(jnp.sum(a * a, axis=-1, keepdims=True))
    nb = jnp.sqrt(jnp.sum(b * b, axis=-1, keepdims=True))
    cos = dot / jnp.maximum(na * nb, 1e-8)
    o_ref[...] = jnp.broadcast_to(cos, o_ref.shape)


@functools.lru_cache(maxsize=None)
def _cosine_call(Bp, C):
    return jax.jit(pl.pallas_call(
        _cosine_kernel, out_shape=jax.ShapeDtypeStruct((Bp, 128), jnp.float32)))


def cosine_similarity(a, b):
    B, C = a.shape
    Bp = _rup(B, 8)
    ap = jnp.pad(a, ((0, Bp - B), (0, 0)))
    bp = jnp.pad(b, ((0, Bp - B), (0, 0)))
    return _cosine_call(Bp, C)(ap, bp)[:B, 0]


# ---------------------------------------------------------------------------
# Small XLA-fused glue (no extra HBM round trips beyond the required pad).
# ---------------------------------------------------------------------------
@functools.partial(jax.jit, static_argnames=("extra_w",))
def _affine_pad(x, s, b, extra_w):
    """Eval-mode BN affine fused into the conv zero-pad: pad(s*x + b)."""
    y = x.astype(jnp.float32) * s + b
    y = jnp.pad(y, ((0, 0), (1, 1), (1, 1 + extra_w), (0, 0)))
    return y.astype(jnp.bfloat16)


@jax.jit
def _im2col_input(x):
    """im2col only for the tiny 3-channel input conv (K padded 27 -> 32)."""
    B, H, W, C = x.shape
    xp = jnp.pad(x, ((0, 0), (1, 1), (1, 1), (0, 0)))
    cols = [xp[:, dh:dh + H, dw:dw + W, :]
            for dh in range(3) for dw in range(3)]
    p = jnp.concatenate(cols, axis=-1).reshape(B * H * W, 9 * C)
    p = jnp.pad(p, ((0, 0), (0, 32 - 9 * C)))
    return p.astype(jnp.bfloat16)


# ---------------------------------------------------------------------------
# Network structure.
# ---------------------------------------------------------------------------
def get_blocks_cfg():
    def get_block(cin, depth, n, stride=2):
        return [(cin, depth, stride)] + [(depth, depth, 1)] * (n - 1)
    return (get_block(64, 64, 3) + get_block(64, 128, 4)
            + get_block(128, 256, 14) + get_block(256, 512, 3))


def bottleneck_ir_se(x, q, in_c, depth, stride):
    B, H, W, _ = x.shape
    OH, OW = H // stride, W // stride

    # shortcut branch
    if in_c == depth:                                  # MaxPool2d(1, stride)
        shortcut = x if stride == 1 else x[:, ::stride, ::stride, :]
    else:                                              # Conv1x1(stride) + BN
        xs = x if stride == 1 else x[:, ::stride, ::stride, :]
        sc = fused_matmul(xs.reshape(B * OH * OW, in_c), q["short_w"],
                          q["short_s"], q["short_b"], q["one"],
                          out_dtype=jnp.bfloat16)
        shortcut = sc.reshape(B, OH, OW, depth)

    # residual branch: BN1 -> conv1 -> PReLU -> conv2(stride) -> BN2
    owp1 = _rup(W, 8)
    ow2p = _rup(OW, 8)
    w1out = (ow2p + 2) if stride == 1 else (2 * ow2p + 2)
    x1 = _affine_pad(x, q["bn1_s"], q["bn1_b"], extra_w=owp1 - W)
    r = conv3x3(x1, q["w1"], q["one"], q["zero"], q["prelu"],
                kh=3, kw=3, ce=in_c, oh=H, ow=W, row_stride=1,
                out_pad_shape=(H + 2, w1out))          # padded for conv2
    if stride == 1:
        r = conv3x3(r, q["w2"], q["bn2_s"], q["bn2_b"], q["one"],
                    kh=3, kw=3, ce=depth, oh=OH, ow=OW, row_stride=1)
    else:                                              # column-pair stride-2
        r = conv3x3(r.reshape(B, H + 2, w1out // 2, 2 * depth),
                    q["w2"], q["bn2_s"], q["bn2_b"], q["one"],
                    kh=3, kw=2, ce=2 * depth, oh=OH, ow=OW, row_stride=2)

    # SE gate + residual add (one fused kernel)
    return se_residual(r, shortcut, q["fc1"], q["fc2"])


def backbone_forward(x112, prep):
    B = x112.shape[0]
    # input layer: Conv3x3(3->64) + BN + PReLU (BN/PReLU fused into epilogue)
    patches = _im2col_input(x112)
    y = fused_matmul(patches, prep["in_w"], prep["in_s"], prep["in_b"],
                     prep["in_alpha"], out_dtype=jnp.bfloat16, tm=3136)
    x = y.reshape(B, 112, 112, 64)
    # body: 24 bottleneck_IR_SE units
    for (cin, depth, stride), q in zip(get_blocks_cfg(), prep["body"]):
        x = bottleneck_ir_se(x, q, cin, depth, stride)
    # output layer: BN2d folded into Linear weights, Dropout(eval)=identity,
    # Flatten, Linear + BN1d folded into the matmul epilogue.
    flat = x.reshape(B, 7 * 7 * 512)
    emb = fused_matmul(flat, prep["out_w"], prep["out_s"], prep["out_b"],
                       prep["one512"], out_dtype=jnp.float32, tk=3584)
    return emb     # l2_norm skipped: cosine similarity is scale invariant


def _pool_matrix(out_size, in_size):
    P = np.zeros((out_size, in_size), np.float32)
    for i in range(out_size):
        s = (i * in_size) // out_size
        e = -((-(i + 1) * in_size) // out_size)
        P[i, s:e] = 1.0 / (e - s)
    return P


def _apply_pool_h(x, P):
    B, H, W, C = x.shape
    OH = P.shape[0]
    xm = jnp.transpose(x, (1, 0, 2, 3)).reshape(H, B * W * C)
    y = fused_matmul(P, xm, out_dtype=jnp.float32)
    return y.reshape(OH, B, W, C).transpose(1, 0, 2, 3)


def _apply_pool_w(x, P):
    B, H, W, C = x.shape
    OW = P.shape[0]
    xm = jnp.transpose(x, (2, 0, 1, 3)).reshape(W, B * H * C)
    y = fused_matmul(P, xm, out_dtype=jnp.float32)
    return y.reshape(OW, B, H, C).transpose(1, 2, 0, 3)


def extract_feats(x, prep):
    # x: (B, H, W, 3) NHWC; the torch reference checks x.shape[2] (= H NCHW).
    B, H, W, _ = x.shape
    p112_256 = _pool_matrix(112, 256)
    if H != 256:      # AdaptiveAvgPool((256,256)) then ((112,112)), composed
        Ph = p112_256 @ _pool_matrix(256, H)
        Pw = p112_256 @ _pool_matrix(256, W)
    else:
        Ph = p112_256
        Pw = _pool_matrix(112, W)
    x = _apply_pool_h(x, jnp.asarray(Ph))
    x = _apply_pool_w(x, jnp.asarray(Pw))
    return backbone_forward(x, prep)


def id_loss_forward(y_hat, y, prep):
    y_feats = extract_feats(y, prep)
    y_hat_feats = extract_feats(y_hat, prep)
    return cosine_similarity(y_feats, y_hat_feats)     # shape (n_samples,)


# ---------------------------------------------------------------------------
# Parameters (synthetic, deterministic) and kernel-ready preparation.
# ---------------------------------------------------------------------------
def bn_scale_bias(bn):
    scale = bn["gamma"] / jnp.sqrt(bn["var"] + BN_EPS)
    bias = bn["beta"] - bn["mean"] * scale
    return scale, bias


def init_params(key):
    # TODO(synk): reference loads loss/models/model_ir_se50.pth; weights here
    # are synthetic deterministic (He-style) and BN uses eval running stats.
    it = iter(jax.random.split(key, 256))

    def nk():
        return next(it)

    def conv_w(kh, kw, cin, cout):
        return (jax.random.normal(nk(), (kh, kw, cin, cout), jnp.float32)
                / np.sqrt(kh * kw * cin))

    def dense_w(cin, cout):
        return jax.random.normal(nk(), (cin, cout), jnp.float32) / np.sqrt(cin)

    def bn(c):
        return dict(gamma=jnp.ones((c,), jnp.float32),
                    beta=jnp.zeros((c,), jnp.float32),
                    mean=jnp.zeros((c,), jnp.float32),
                    var=jnp.ones((c,), jnp.float32))

    params = {"input": dict(conv_w=conv_w(3, 3, 3, 64), bn=bn(64),
                            prelu=0.25 * jnp.ones((64,), jnp.float32))}
    body = []
    for (cin, depth, stride) in get_blocks_cfg():
        p = dict(bn1=bn(cin),
                 conv1_w=conv_w(3, 3, cin, depth),
                 prelu=0.25 * jnp.ones((depth,), jnp.float32),
                 conv2_w=conv_w(3, 3, depth, depth),
                 bn2=bn(depth),
                 fc1_w=dense_w(depth, depth // 16),
                 fc2_w=dense_w(depth // 16, depth))
        if cin != depth:
            p["short_w"] = dense_w(cin, depth)
            p["short_bn"] = bn(depth)
        body.append(p)
    params["body"] = body
    params["out"] = dict(bn2d=bn(512),
                         lin_w=dense_w(512 * 7 * 7, 512),
                         lin_b=jnp.zeros((512,), jnp.float32),
                         bn1d=bn(512))
    return params


def prepare_params(raw):
    """Fold eval BN into conv/linear epilogues, pack conv weights into
    tap-stacked bf16 matrices, pad SE weights to lane width."""
    prep = {}
    s, b = bn_scale_bias(raw["input"]["bn"])
    w_in = raw["input"]["conv_w"].reshape(27, 64)
    prep["in_w"] = jnp.pad(w_in, ((0, 5), (0, 0))).astype(jnp.bfloat16)
    prep["in_s"] = s.reshape(1, 64)
    prep["in_b"] = b.reshape(1, 64)
    prep["in_alpha"] = raw["input"]["prelu"].reshape(1, 64)

    body = []
    for (cin, depth, stride), p in zip(get_blocks_cfg(), raw["body"]):
        q = {}
        s1, b1 = bn_scale_bias(p["bn1"])
        q["bn1_s"] = s1.reshape(1, 1, 1, cin)
        q["bn1_b"] = b1.reshape(1, 1, 1, cin)
        q["w1"] = p["conv1_w"].reshape(9 * cin, depth).astype(jnp.bfloat16)
        q["prelu"] = p["prelu"].reshape(1, depth)
        s2, b2 = bn_scale_bias(p["bn2"])
        q["bn2_s"] = s2.reshape(1, depth)
        q["bn2_b"] = b2.reshape(1, depth)
        if stride == 1:
            q["w2"] = p["conv2_w"].reshape(9 * depth, depth).astype(jnp.bfloat16)
        else:
            # stride-2 conv as a column-pair conv: 6 taps over 2*depth channels
            w = p["conv2_w"]                      # (3, 3, depth, depth)
            zero = jnp.zeros((depth, depth), jnp.float32)
            taps = []
            for dh in range(3):
                taps.append(jnp.concatenate([w[dh, 0], w[dh, 1]], axis=0))
                taps.append(jnp.concatenate([w[dh, 2], zero], axis=0))
            q["w2"] = jnp.concatenate(taps, axis=0).astype(jnp.bfloat16)
        r = depth // 16
        q["fc1"] = jnp.zeros((depth, 128), jnp.float32).at[:, :r].set(p["fc1_w"])
        q["fc2"] = jnp.zeros((128, depth), jnp.float32).at[:r, :].set(p["fc2_w"])
        q["one"] = jnp.ones((1, depth), jnp.float32)
        q["zero"] = jnp.zeros((1, depth), jnp.float32)
        if cin != depth:
            ss, sb = bn_scale_bias(p["short_bn"])
            q["short_w"] = p["short_w"].astype(jnp.bfloat16)
            q["short_s"] = ss.reshape(1, depth)
            q["short_b"] = sb.reshape(1, depth)
        body.append(q)
    prep["body"] = body

    # output layer: fold BN2d into the Linear weight, BN1d into the epilogue
    s2d, b2d = bn_scale_bias(raw["out"]["bn2d"])
    st = jnp.tile(s2d, 49)                       # NHWC flatten order (h, w, c)
    bt = jnp.tile(b2d, 49)
    W = raw["out"]["lin_w"]
    s1d, b1d = bn_scale_bias(raw["out"]["bn1d"])
    c = bt @ W + raw["out"]["lin_b"]
    prep["out_w"] = (W * st[:, None]).astype(jnp.bfloat16)
    prep["out_s"] = s1d.reshape(1, 512)
    prep["out_b"] = (s1d * c + b1d).reshape(1, 512)
    prep["one512"] = jnp.ones((1, 512), jnp.float32)
    return prep


if __name__ == "__main__":
    key = jax.random.PRNGKey(0)
    k1, k2, k3 = jax.random.split(key, 3)
    B = 2
    # layout: NHWC images (the torch module would receive NCHW (B, 3, 32, 32))
    y_hat = jax.random.normal(k1, (B, 32, 32, 3), jnp.float32)
    y = jax.random.normal(k2, (B, 32, 32, 3), jnp.float32)
    raw_params = init_params(k3)
    prep = prepare_params(raw_params)

    loss = id_loss_forward(y_hat, y, prep)
    loss = jax.block_until_ready(loss)
    assert loss.shape == (B,) and loss.dtype == jnp.float32
    assert bool(jnp.all(jnp.isfinite(loss)))
    print("KERNEL_OK")
</pallas_src>

<mosaic_0001>
module attributes {stable_mosaic.version = 11 : i64} {
  func.func @_mm_kernel(%arg0: i32, %arg1: i32, %arg2: memref<112x32xf32, #tpu.memory_space<vmem>>, %arg3: memref<32x192xf32, #tpu.memory_space<vmem>>, %arg4: memref<1x192xf32, #tpu.memory_space<vmem>>, %arg5: memref<1x192xf32, #tpu.memory_space<vmem>>, %arg6: memref<1x192xf32, #tpu.memory_space<vmem>>, %arg7: memref<112x192xf32, #tpu.memory_space<vmem>>, %arg8: memref<112x192xf32, #tpu.memory_space<vmem>>) attributes {dimension_semantics = [#tpu.dimension_semantics<parallel>, #tpu.dimension_semantics<arbitrary>], iteration_bounds = array<i64: 1, 1>, scalar_prefetch = 0 : i64, scratch_operands = 1 : i64, tpu.core_type = #tpu.core_type<tc>, window_params = [{transform_indices = @transform_0, window_bounds = array<i64: 112, 32>}, {transform_indices = @transform_1, window_bounds = array<i64: 32, 192>}, {pipeline_mode = #tpu.pipeline_mode<synchronous>, transform_indices = @transform_2, window_bounds = array<i64: 1, 192>}, {pipeline_mode = #tpu.pipeline_mode<synchronous>, transform_indices = @transform_3, window_bounds = array<i64: 1, 192>}, {pipeline_mode = #tpu.pipeline_mode<synchronous>, transform_indices = @transform_4, window_bounds = array<i64: 1, 192>}, {transform_indices = @transform_5, window_bounds = array<i64: 112, 192>}]} {
    %c0_i32 = arith.constant 0 : i32
    %0 = arith.cmpi eq, %arg1, %c0_i32 : i32
    %1 = arith.extui %0 : i1 to i32
    %c0_i32_0 = arith.constant 0 : i32
    %2 = arith.cmpi ne, %1, %c0_i32_0 : i32
    scf.if %2 {
      %cst_10 = arith.constant 0.000000e+00 : f32
      %12 = vector.broadcast %cst_10 : f32 to vector<112x192xf32>
      %c0_11 = arith.constant 0 : index
      %c0_12 = arith.constant 0 : index
      %13 = vector.load %arg8[%c0_11, %c0_12] : memref<112x192xf32, #tpu.memory_space<vmem>>, vector<112x192xf32>
      tpu.vector_store %arg8[%c0_11, %c0_12], %12 {strides = array<i32>} : memref<112x192xf32, #tpu.memory_space<vmem>>, vector<112x192xf32>,
    } else {
    }
    %c0 = arith.constant 0 : index
    %c0_1 = arith.constant 0 : index
    %3 = vector.load %arg8[%c0, %c0_1] : memref<112x192xf32, #tpu.memory_space<vmem>>, vector<112x192xf32>
    %c0_2 = arith.constant 0 : index
    %c0_3 = arith.constant 0 : index
    %4 = vector.load %arg2[%c0_2, %c0_3] : memref<112x32xf32, #tpu.memory_space<vmem>>, vector<112x32xf32>
    %c0_4 = arith.constant 0 : index
    %c0_5 = arith.constant 0 : index
    %5 = vector.load %arg3[%c0_4, %c0_5] : memref<32x192xf32, #tpu.memory_space<vmem>>, vector<32x192xf32>
    %cst = arith.constant dense<0.000000e+00> : vector<112x192xf32>
    %6 = tpu.matmul %4, %5, %cst {dimension_numbers = #tpu.dot_dimension_numbers<[1], [0], [0], [1], [0, 0, 1, 1], [], []>} : vector<112x32xf32>, vector<32x192xf32>, vector<112x192xf32> -> vector<112x192xf32>
    %7 = arith.addf %3, %6 : vector<112x192xf32>
    %c0_6 = arith.constant 0 : index
    %c0_7 = arith.constant 0 : index
    %8 = vector.load %arg8[%c0_6, %c0_7] : memref<112x192xf32, #tpu.memory_space<vmem>>, vector<112x192xf32>
    tpu.vector_store %arg8[%c0_6, %c0_7], %7 {strides = array<i32>} : memref<112x192xf32, #tpu.memory_space<vmem>>, vector<112x192xf32>,
    %c0_i32_8 = arith.constant 0 : i32
    %9 = arith.cmpi eq, %arg1, %c0_i32_8 : i32
    %10 = arith.extui %9 : i1 to i32
    %c0_i32_9 = arith.constant 0 : i32
    %11 = arith.cmpi ne, %10, %c0_i32_9 : i32
    scf.if %11 {
      %c0_10 = arith.constant 0 : index
      %c0_11 = arith.constant 0 : index
      %12 = vector.load %arg8[%c0_10, %c0_11] : memref<112x192xf32, #tpu.memory_space<vmem>>, vector<112x192xf32>
      %c0_12 = arith.constant 0 : index
      %c0_13 = arith.constant 0 : index
      %13 = vector.load %arg4[%c0_12, %c0_13] : memref<1x192xf32, #tpu.memory_space<vmem>>, vector<1x192xf32>
      %14 = vector.broadcast %13 : vector<1x192xf32> to vector<112x192xf32>
      %15 = arith.mulf %12, %14 : vector<112x192xf32>
      %c0_14 = arith.constant 0 : index
      %c0_15 = arith.constant 0 : index
      %16 = vector.load %arg5[%c0_14, %c0_15] : memref<1x192xf32, #tpu.memory_space<vmem>>, vector<1x192xf32>
      %17 = vector.broadcast %16 : vector<1x192xf32> to vector<112x192xf32>
      %18 = arith.addf %15, %17 : vector<112x192xf32>
      %cst_16 = arith.constant 0.000000e+00 : f32
      %19 = vector.broadcast %cst_16 : f32 to vector<112x192xf32>
      %20 = arith.cmpf oge, %18, %19 : vector<112x192xf32>
      %c0_17 = arith.constant 0 : index
      %c0_18 = arith.constant 0 : index
      %21 = vector.load %arg6[%c0_17, %c0_18] : memref<1x192xf32, #tpu.memory_space<vmem>>, vector<1x192xf32>
      %22 = vector.broadcast %21 : vector<1x192xf32> to vector<112x192xf32>
      %23 = arith.mulf %22, %18 : vector<112x192xf32>
      %24 = arith.select %20, %18, %23 : vector<112x192xi1>, vector<112x192xf32>
      %c0_19 = arith.constant 0 : index
      %c0_20 = arith.constant 0 : index
      %25 = vector.load %arg7[%c0_19, %c0_20] : memref<112x192xf32, #tpu.memory_space<vmem>>, vector<112x192xf32>
      tpu.vector_store %arg7[%c0_19, %c0_20], %24 {strides = array<i32>} : memref<112x192xf32, #tpu.memory_space<vmem>>, vector<112x192xf32>,
    } else {
    }
    return
  }
  func.func @transform_0(%arg0: i32, %arg1: i32) -> (i32, i32) {
    %c0_i32 = arith.constant 0 : i32
    return %arg0, %arg1 : i32, i32
  }
  func.func @transform_1(%arg0: i32, %arg1: i32) -> (i32, i32) {
    %c0_i32 = arith.constant 0 : i32
    %c0_i32_0 = arith.constant 0 : i32
    return %arg1, %c0_i32 : i32, i32
  }
  func.func @transform_2(%arg0: i32, %arg1: i32) -> (i32, i32) {
    %c0_i32 = arith.constant 0 : i32
    %c0_i32_0 = arith.constant 0 : i32
    %c0_i32_1 = arith.constant 0 : i32
    return %c0_i32, %c0_i32_0 : i32, i32
  }
  func.func @transform_3(%arg0: i32, %arg1: i32) -> (i32, i32) {
    %c0_i32 = arith.constant 0 : i32
    %c0_i32_0 = arith.constant 0 : i32
    %c0_i32_1 = arith.constant 0 : i32
    return %c0_i32, %c0_i32_0 : i32, i32
  }
  func.func @transform_4(%arg0: i32, %arg1: i32) -> (i32, i32) {
    %c0_i32 = arith.constant 0 : i32
    %c0_i32_0 = arith.constant 0 : i32
    %c0_i32_1 = arith.constant 0 : i32
    return %c0_i32, %c0_i32_0 : i32, i32
  }
  func.func @transform_5(%arg0: i32, %arg1: i32) -> (i32, i32) {
    %c0_i32 = arith.constant 0 : i32
    %c0_i32_0 = arith.constant 0 : i32
    return %arg0, %c0_i32 : i32, i32
  }
}

</mosaic_0001>

<bundles_post_ra>
// kernel: tpu_custom_call.1
= control target key start
LH: loop header
LB: loop body
LE: loop exit
PB: predicated region body
PF: predicated region fallthrough
CT: control target
= control target key end

     0   :  { %v618_v3 = vmov 0.0   ;;  %vm103_vm0 = vcmask 261120   ;;  %vm25_vm1 = vcmask 523264   ;;  %v385_v27 = vlaneseq  ;;  %s1000_s1 = inlined_call_operand.vmem [shape: f32[32,192], index: 1, kind: input, shape index: {}]   ;;  %s1001_s0 = inlined_call_operand.vmem [shape: f32[112,32], index: 0, kind: input, shape index: {}]   ;;  %s1002_s2 = inlined_call_operand.vmem [shape: f32[1,192], index: 2, kind: input, shape index: {}]   ;;  %s1003_s3 = inlined_call_operand.vmem [shape: f32[1,192], index: 3, kind: input, shape index: {}]   ;;  %s1004_s4 = inlined_call_operand.vmem [shape: f32[1,192], index: 4, kind: input, shape index: {}]   ;;  %s1005_s5 = inlined_call_operand.vmem [shape: f32[112,192], index: 5, kind: output, shape index: {}]  }
   0x1   :  { %v96_v0 = vld [vmem:[%s1000_s1 + $0x8] sm:$0xff]  ;;  %v98_v1 = vld [vmem:[%s1000_s1 + $0x18] sm:$0xff]  ;;  %v95_v2 = vld [vmem:[%s1000_s1] sm:$0xff]  ;;  %210 = vmatprep.mubr.f32.mxu0 %v618_v3  ;;  %252 = vmatprep.mubr.f32.mxu1 %v618_v3  ;;  %26 = vst.msk [vmem:[#allocation2 + $0x8] sm:$0xff] %vm25_vm1, %v618_v3 }
   0x2   :  { %v605_v4 = vpack.c.bf16 %v98_v1, %v96_v0  ;;  %v97_v5 = vld [vmem:[%s1000_s1 + $0x10] sm:$0xff]  ;;  %v100_v6 = vld [vmem:[%s1000_s1 + $0x28] sm:$0xff]  ;;  %v102_v7 = vld [vmem:[%s1000_s1 + $0x38] sm:$0xff]  ;;  %28 = vst.msk [vmem:[#allocation2 + $0x18] sm:$0xff] %vm25_vm1, %v618_v3  ;;  %v386_v28 = vshrl.u32 %v385_v27, 7 }
   0x3   :  { %v607_v8 = vpack.c.bf16 %v97_v5, %v95_v2  ;;  %v609_v9 = vpack.c.bf16 %v102_v7, %v100_v6  ;;  %v99_v10 = vld [vmem:[%s1000_s1 + $0x20] sm:$0xff]  ;;  %v101_v11 = vld [vmem:[%s1000_s1 + $0x30] sm:$0xff]  ;;  %v88_v14 = vld [vmem:[%s1001_s0 + $0x38] sm:$0xff]  ;;  %30 = vst.msk [vmem:[#allocation2 + $0x28] sm:$0xff] %vm25_vm1, %v618_v3 }
   0x4   :  { %606 = vmatprep.subr.bf16.mxu0 %v605_v4  ;;  %613 = vmatprep.subr.bf16.mxu1 %v605_v4  ;;  %v611_v12 = vpack.c.bf16 %v101_v11, %v99_v10  ;;  %v81_v13 = vld [vmem:[%s1001_s0] sm:$0xff]  ;;  %v82_v15 = vld [vmem:[%s1001_s0 + $0x8] sm:$0xff]  ;;  %v83_v17 = vld [vmem:[%s1001_s0 + $0x10] sm:$0xff]  ;;  %32 = vst.msk [vmem:[#allocation2 + $0x38] sm:$0xff] %vm25_vm1, %v618_v3  ;;  %v387_v29 = vsub.s32 0, %v386_v28  ;;  %v391_v48 = vsub.s32 1, %v386_v28 }
   0x5   :  { %608 = vmatpush1.bf16.msra.mxu0 %v607_v8  ;;  %615 = vmatpush1.bf16.msra.mxu1 %v607_v8  ;;  %v89_v16 = vld [vmem:[%s1001_s0 + $0x40] sm:$0xff]  ;;  %v90_v18 = vld [vmem:[%s1001_s0 + $0x48] sm:$0xff]  ;;  %v84_v19 = vld [vmem:[%s1001_s0 + $0x18] sm:$0xff]  ;;  %34 = vst.msk [vmem:[#allocation2 + $0x48] sm:$0xff] %vm25_vm1, %v618_v3 }
   0x6   :  { %610 = vmatprep.subr.bf16.mxu0 %v609_v9  ;;  %614 = vmatprep.subr.bf16.mxu1 %v609_v9  ;;  %v91_v20 = vld [vmem:[%s1001_s0 + $0x50] sm:$0xff]  ;;  %v85_v21 = vld [vmem:[%s1001_s0 + $0x20] sm:$0xff]  ;;  %v92_v22 = vld [vmem:[%s1001_s0 + $0x58] sm:$0xff]  ;;  %36 = vst.msk [vmem:[#allocation2 + $0x58] sm:$0xff] %vm25_vm1, %v618_v3 }
   0x7   :  { %v86_v23 = vld [vmem:[%s1001_s0 + $0x28] sm:$0xff]  ;;  %v93_v24 = vld [vmem:[%s1001_s0 + $0x60] sm:$0xff]  ;;  %v87_v25 = vld [vmem:[%s1001_s0 + $0x30] sm:$0xff]  ;;  %38 = vst.msk [vmem:[#allocation2 + $0x68] sm:$0xff] %vm25_vm1, %v618_v3 }
   0x8   :  { %v94_v26 = vld [vmem:[%s1001_s0 + $0x68] sm:$0xff]  ;;  %40 = vst.msk [vmem:[#allocation2 + $0x78] sm:$0xff] %vm25_vm1, %v618_v3  ;;  %42 = vst.msk [vmem:[#allocation2 + $0x88] sm:$0xff] %vm25_vm1, %v618_v3  ;;  %v383_v30 = vld [vmem:[%s1002_s2] sm:$0x3] }
   0x9   :  { %612 = vmatpush1.bf16.msra.mxu0 %v611_v12  ;;  %616 = vmatpush1.bf16.msra.mxu1 %v611_v12  ;;  %44 = vst.msk [vmem:[#allocation2 + $0x98] sm:$0xff] %vm25_vm1, %v618_v3  ;;  %46 = vst.msk [vmem:[#allocation2 + $0xa8] sm:$0xff] %vm25_vm1, %v618_v3  ;;  %v423_v31 = vld [vmem:[%s1003_s3] sm:$0x3]  ;;  %v777_v32 = vrot.slane %v383_v30, %v387_v29  ;;  %v54_v33 = vld [vmem:[#allocation2 + $0x8] sm:$0xff]  ;;  %v794_v61 = vrot.slane %v383_v30, %v391_v48 }
   0xa   :  { %48 = vst.msk [vmem:[#allocation2 + $0xb8] sm:$0xff] %vm25_vm1, %v618_v3  ;;  %50 = vst.msk [vmem:[#allocation2 + $0xc8] sm:$0xff] %vm25_vm1, %v618_v3  ;;  %v491_v36 = vld [vmem:[%s1004_s4] sm:$0x3]  ;;  %v782_v38 = vrot.slane %v423_v31, %v387_v29  ;;  %v56_v46 = vld [vmem:[#allocation2 + $0x18] sm:$0xff]  ;;  %v796_v62 = vrot.slane %v423_v31, %v391_v48 }
   0xb   :  { %52 = vst.msk [vmem:[#allocation2 + $0xd8] sm:$0xff] %vm25_vm1, %v618_v3  ;;  %v785_v44 = vrot.slane %v491_v36, %v387_v29  ;;  %v58_v59 = vld [vmem:[#allocation2 + $0x28] sm:$0xff]  ;;  %v810_v12 = vrot.slane %v491_v36, %v391_v48  ;;  %v60_v36 = vld [vmem:[#allocation2 + $0x38] sm:$0xff] }
   0xc   :  { %591 = vmatmul.mubr.msk.f32.vlgmr.msra.gmra.mrb[0].mxu0 %vm103_vm0, %v81_v13  ;;  %598 = vmatmul.mubr.msk.f32.vlgmr.msra.gmra.mrb[0].mxu1 %vm103_vm0, %v88_v14 }
   0xd   :  { %216 = vmatprep.mubr.f32.mxu0 %v618_v3  ;;  %258 = vmatprep.mubr.f32.mxu1 %v618_v3 }
   0xf   :  { %v68_v34 = vld [vmem:[#allocation2 + $0x78] sm:$0xff]  ;;  %v70_v47 = vld [vmem:[#allocation2 + $0x88] sm:$0xff] }
  0x10   :  { %592 = vmatmul.mubr.msk.f32.gmra.mrb[2].mxu0 %vm103_vm0, %v82_v15  ;;  %599 = vmatmul.mubr.msk.f32.gmra.mrb[2].mxu1 %vm103_vm0, %v89_v16  ;;  %v72_v60 = vld [vmem:[#allocation2 + $0x98] sm:$0xff] }
  0x11   :  { %222 = vmatprep.mubr.f32.mxu0 %v618_v3  ;;  %264 = vmatprep.mubr.f32.mxu1 %v618_v3 }
  0x14   :  { %593 = vmatmul.mubr.msk.f32.gmra.mrb[4].mxu0 %vm103_vm0, %v83_v17  ;;  %600 = vmatmul.mubr.msk.f32.gmra.mrb[4].mxu1 %vm103_vm0, %v90_v18 }
  0x15   :  { %228 = vmatprep.mubr.f32.mxu0 %v618_v3  ;;  %270 = vmatprep.mubr.f32.mxu1 %v618_v3 }
  0x18   :  { %594 = vmatmul.mubr.msk.f32.gmra.mrb[6].mxu0 %vm103_vm0, %v84_v19  ;;  %601 = vmatmul.mubr.msk.f32.gmra.mrb[6].mxu1 %vm103_vm0, %v91_v20 }
  0x19   :  { %234 = vmatprep.mubr.f32.mxu0 %v618_v3  ;;  %276 = vmatprep.mubr.f32.mxu1 %v618_v3 }
  0x1c   :  { %595 = vmatmul.mubr.msk.f32.gmra.mrb[8].mxu0 %vm103_vm0, %v85_v21  ;;  %602 = vmatmul.mubr.msk.f32.gmra.mrb[8].mxu1 %vm103_vm0, %v92_v22 }
  0x1d   :  { %240 = vmatprep.mubr.f32.mxu0 %v618_v3  ;;  %282 = vmatprep.mubr.f32.mxu1 %v618_v3 }
  0x20   :  { %596 = vmatmul.mubr.msk.f32.gmra.mrb[10].mxu0 %vm103_vm0, %v86_v23  ;;  %603 = vmatmul.mubr.msk.f32.gmra.mrb[10].mxu1 %vm103_vm0, %v93_v24 }
  0x21   :  { %246 = vmatprep.mubr.f32.mxu0 %v618_v3  ;;  %288 = vmatprep.mubr.f32.mxu1 %v618_v3 }
  0x24   :  { %597 = vmatmul.mubr.msk.f32.gmra.mrb[12].mxu0 %vm103_vm0, %v87_v25  ;;  %604 = vmatmul.mubr.msk.f32.gmra.mrb[12].mxu1 %vm103_vm0, %v94_v26 }
  0xdf   :  { %v212_v35 = vpop.f32.mrb[0].mxu0  ;;  %v254_v37 = vpop.f32.mrb[0].mxu1 }
  0xe0   :  { %v214_v39 = vpop.f32.mrb[1].mxu0  ;;  %v256_v40 = vpop.f32.mrb[1].mxu1  ;;  %v395_v43 = vmul.f32 %v777_v32, %v212_v35  ;;  %v409_v45 = vmul.f32 %v777_v32, %v254_v37 }
  0xe1   :  { %v296_v41 = vadd.f32 %v214_v39, %v54_v33  ;;  %v310_v42 = vadd.f32 %v256_v40, %v68_v34 }
  0xe2   :  { %v435_v51 = vadd.f32 %v782_v38, %v395_v43  ;;  %v449_v52 = vadd.f32 %v782_v38, %v409_v45 }
  0xe3   :  { %325 = vst.msk [vmem:[#allocation2 + $0x8] sm:$0xff] %vm25_vm1, %v296_v41  ;;  %339 = vst.msk [vmem:[#allocation2 + $0x78] sm:$0xff] %vm25_vm1, %v310_v42  ;;  %v218_v49 = vpop.f32.mrb[2].mxu0  ;;  %v260_v50 = vpop.f32.mrb[2].mxu1 }
  0xe4   :  { %v220_v53 = vpop.f32.mrb[3].mxu0  ;;  %v262_v54 = vpop.f32.mrb[3].mxu1  ;;  %vm463_vm2 = vcmp.ge.f32.partialorder %v435_v51, 0.0  ;;  %v503_v57 = vmul.f32 %v785_v44, %v435_v51  ;;  %vm477_vm3 = vcmp.ge.f32.partialorder %v449_v52, 0.0  ;;  %v517_v58 = vmul.f32 %v785_v44, %v449_v52 }
  0xe5   :  { %v298_v55 = vadd.f32 %v220_v53, %v56_v46  ;;  %v312_v56 = vadd.f32 %v262_v54, %v70_v47  ;;  %v397_v63 = vmul.f32 %v777_v32, %v218_v49  ;;  %v411_v0 = vmul.f32 %v777_v32, %v260_v50 }
  0xe6   :  { %v531_v3 = vsel %vm463_vm2, %v435_v51, %v503_v57  ;;  %v545_v4 = vsel %vm477_vm3, %v449_v52, %v517_v58 }
  0xe7   :  { %327 = vst.msk [vmem:[#allocation2 + $0x18] sm:$0xff] %vm25_vm1, %v298_v55  ;;  %341 = vst.msk [vmem:[#allocation2 + $0x88] sm:$0xff] %vm25_vm1, %v312_v56  ;;  %v224_v1 = vpop.f32.mrb[4].mxu0  ;;  %v266_v2 = vpop.f32.mrb[4].mxu1  ;;  %v437_v7 = vadd.f32 %v782_v38, %v397_v63  ;;  %v451_v8 = vadd.f32 %v782_v38, %v411_v0 }
  0xe8   :  { %v226_v5 = vpop.f32.mrb[5].mxu0  ;;  %v268_v6 = vpop.f32.mrb[5].mxu1  ;;  %559 = vst [vmem:[%s1005_s5] sm:$0xff] %v531_v3  ;;  %573 = vst [vmem:[%s1005_s5 + $0x70] sm:$0xff] %v545_v4  ;;  %v399_v14 = vmul.f32 %v777_v32, %v224_v1  ;;  %v413_v15 = vmul.f32 %v777_v32, %v266_v2 }
  0xe9   :  { %v300_v9 = vadd.f32 %v226_v5, %v58_v59  ;;  %v314_v10 = vadd.f32 %v268_v6, %v72_v60  ;;  %vm465_vm4 = vcmp.ge.f32.partialorder %v437_v7, 0.0  ;;  %v505_v18 = vmul.f32 %v785_v44, %v437_v7  ;;  %v74_v60 = vld [vmem:[#allocation2 + $0xa8] sm:$0xff] }
  0xea   :  { %v356_v11 = vld [vmem:[#allocation2 + $0x8] sm:$0xff]  ;;  %v370_v13 = vld [vmem:[#allocation2 + $0x78] sm:$0xff]  ;;  %vm479_vm5 = vcmp.ge.f32.partialorder %v451_v8, 0.0  ;;  %v519_v21 = vmul.f32 %v785_v44, %v451_v8  ;;  %v439_v22 = vadd.f32 %v782_v38, %v399_v14  ;;  %v453_v23 = vadd.f32 %v782_v38, %v413_v15 }
  0xeb   :  { %v396_v16 = vmul.f32 %v794_v61, %v356_v11  ;;  %v410_v17 = vmul.f32 %v794_v61, %v370_v13  ;;  %329 = vst.msk [vmem:[#allocation2 + $0x28] sm:$0xff] %vm25_vm1, %v300_v9  ;;  %343 = vst.msk [vmem:[#allocation2 + $0x98] sm:$0xff] %vm25_vm1, %v314_v10  ;;  %v230_v19 = vpop.f32.mrb[6].mxu0  ;;  %v272_v20 = vpop.f32.mrb[6].mxu1  ;;  %v533_v28 = vsel %vm465_vm4, %v437_v7, %v505_v18  ;;  %v62_v13 = vld [vmem:[#allocation2 + $0x48] sm:$0xff] }
  0xec   :  { %v232_v24 = vpop.f32.mrb[7].mxu0  ;;  %v274_v25 = vpop.f32.mrb[7].mxu1  ;;  %561 = vst [vmem:[%s1005_s5 + $0x10] sm:$0xff] %v533_v28  ;;  %v547_v29 = vsel %vm479_vm5, %v451_v8, %v519_v21  ;;  %vm467_vm6 = vcmp.ge.f32.partialorder %v439_v22, 0.0  ;;  %v507_v33 = vmul.f32 %v785_v44, %v439_v22  ;;  %vm481_vm7 = vcmp.ge.f32.partialorder %v453_v23, 0.0  ;;  %v64_v21 = vld [vmem:[#allocation2 + $0x58] sm:$0xff] }
  0xed   :  { %v436_v26 = vadd.f32 %v796_v62, %v396_v16  ;;  %v450_v27 = vadd.f32 %v796_v62, %v410_v17  ;;  %575 = vst [vmem:[%s1005_s5 + $0x80] sm:$0xff] %v547_v29  ;;  %v521_v43 = vmul.f32 %v785_v44, %v453_v23  ;;  %v401_v49 = vmul.f32 %v777_v32, %v230_v19  ;;  %v76_v16 = vld [vmem:[#allocation2 + $0xb8] sm:$0xff] }
  0xee   :  { %v358_v30 = vld [vmem:[#allocation2 + $0x18] sm:$0xff]  ;;  %v372_v31 = vld [vmem:[#allocation2 + $0x88] sm:$0xff]  ;;  %v535_v42 = vsel %vm467_vm6, %v439_v22, %v507_v33  ;;  %v302_v55 = vadd.f32 %v232_v24, %v60_v36  ;;  %v415_v59 = vmul.f32 %v777_v32, %v272_v20  ;;  %v316_v11 = vadd.f32 %v274_v25, %v74_v60 }
  0xef   :  { %vm464_vm8 = vcmp.ge.f32.partialorder %v436_v26, 0.0  ;;  %v504_v34 = vmul.f32 %v810_v12, %v436_v26  ;;  %vm478_vm9 = vcmp.ge.f32.partialorder %v450_v27, 0.0  ;;  %v518_v35 = vmul.f32 %v810_v12, %v450_v27  ;;  %v833_v37 = vpop.f32.mrb[8].mxu0  ;;  %v835_v39 = vpop.f32.mrb[8].mxu1  ;;  %563 = vst [vmem:[%s1005_s5 + $0x20] sm:$0xff] %v535_v42  ;;  %v78_v22 = vld [vmem:[#allocation2 + $0xc8] sm:$0xff] }
  0xf0   :  { %v398_v40 = vmul.f32 %v794_v61, %v358_v30  ;;  %v412_v41 = vmul.f32 %v794_v61, %v372_v31  ;;  %v238_v45 = vpop.f32.mrb[9].mxu0  ;;  %v280_v46 = vpop.f32.mrb[9].mxu1  ;;  %v549_v52 = vsel %vm481_vm7, %v453_v23, %v521_v43  ;;  %v441_v58 = vadd.f32 %v782_v38, %v401_v49  ;;  %331 = vst.msk [vmem:[#allocation2 + $0x38] sm:$0xff] %vm25_vm1, %v302_v55  ;;  %v66_v31 = vld [vmem:[#allocation2 + $0x68] sm:$0xff]  ;;  %v80_v55 = vld [vmem:[#allocation2 + $0xd8] sm:$0xff] }
  0xf1   :  { %v532_v47 = vsel %vm464_vm8, %v436_v26, %v504_v34  ;;  %v546_v48 = vsel %vm478_vm9, %v450_v27, %v518_v35  ;;  %577 = vst [vmem:[%s1005_s5 + $0x90] sm:$0xff] %v549_v52  ;;  %v455_v10 = vadd.f32 %v782_v38, %v415_v59  ;;  %345 = vst.msk [vmem:[#allocation2 + $0xa8] sm:$0xff] %vm25_vm1, %v316_v11 }
  0xf2   :  { %560 = vst.msk [vmem:[%s1005_s5 + $0x8] sm:$0xff] %vm25_vm1, %v532_v47  ;;  %574 = vst.msk [vmem:[%s1005_s5 + $0x78] sm:$0xff] %vm25_vm1, %v546_v48  ;;  %v438_v50 = vadd.f32 %v796_v62, %v398_v40  ;;  %v452_v51 = vadd.f32 %v796_v62, %v412_v41  ;;  %v360_v53 = vld [vmem:[#allocation2 + $0x28] sm:$0xff]  ;;  %v374_v54 = vld [vmem:[#allocation2 + $0x98] sm:$0xff]  ;;  %vm469_vm12 = vcmp.ge.f32.partialorder %v441_v58, 0.0  ;;  %v509_v7 = vmul.f32 %v785_v44, %v441_v58 }
  0xf3   :  { %v400_v56 = vmul.f32 %v794_v61, %v360_v53  ;;  %v414_v57 = vmul.f32 %v794_v61, %v374_v54  ;;  %v242_v63 = vpop.f32.mrb[10].mxu0  ;;  %v284_v0 = vpop.f32.mrb[10].mxu1  ;;  %vm483_vm15 = vcmp.ge.f32.partialorder %v455_v10, 0.0  ;;  %v523_v20 = vmul.f32 %v785_v44, %v455_v10 }
  0xf4   :  { %vm466_vm10 = vcmp.ge.f32.partialorder %v438_v50, 0.0  ;;  %v506_v1 = vmul.f32 %v810_v12, %v438_v50  ;;  %vm480_vm11 = vcmp.ge.f32.partialorder %v452_v51, 0.0  ;;  %v520_v2 = vmul.f32 %v810_v12, %v452_v51  ;;  %v244_v3 = vpop.f32.mrb[11].mxu0  ;;  %v286_v4 = vpop.f32.mrb[11].mxu1 }
  0xf5   :  { %v440_v5 = vadd.f32 %v796_v62, %v400_v56  ;;  %v454_v6 = vadd.f32 %v796_v62, %v414_v57  ;;  %v537_v19 = vsel %vm469_vm12, %v441_v58, %v509_v7  ;;  %v304_v27 = vadd.f32 %v238_v45, %v62_v13 }
  0xf6   :  { %v534_v8 = vsel %vm466_vm10, %v438_v50, %v506_v1  ;;  %v548_v9 = vsel %vm480_vm11, %v452_v51, %v520_v2  ;;  %565 = vst [vmem:[%s1005_s5 + $0x30] sm:$0xff] %v537_v19  ;;  %v551_v28 = vsel %vm483_vm15, %v455_v10, %v523_v20  ;;  %v403_v29 = vmul.f32 %v777_v32, %v833_v37 }
  0xf7   :  { %562 = vst.msk [vmem:[%s1005_s5 + $0x18] sm:$0xff] %vm25_vm1, %v534_v8  ;;  %576 = vst.msk [vmem:[%s1005_s5 + $0x88] sm:$0xff] %vm25_vm1, %v548_v9  ;;  %vm468_vm13 = vcmp.ge.f32.partialorder %v440_v5, 0.0  ;;  %v508_v14 = vmul.f32 %v810_v12, %v440_v5  ;;  %vm482_vm14 = vcmp.ge.f32.partialorder %v454_v6, 0.0  ;;  %v522_v15 = vmul.f32 %v810_v12, %v454_v6  ;;  %v248_v17 = vpop.f32.mrb[12].mxu0  ;;  %v879_v18 = vpop.f32.mrb[12].mxu1 }
  0xf8   :  { %v250_v23 = vpop.f32.mrb[13].mxu0  ;;  %v292_v24 = vpop.f32.mrb[13].mxu1  ;;  %v318_v30 = vadd.f32 %v280_v46, %v76_v16  ;;  %579 = vst [vmem:[%s1005_s5 + $0xa0] sm:$0xff] %v551_v28  ;;  %v362_v33 = vld [vmem:[#allocation2 + $0x38] sm:$0xff]  ;;  %v417_v34 = vmul.f32 %v777_v32, %v835_v39  ;;  %333 = vst.msk [vmem:[#allocation2 + $0x48] sm:$0xff] %vm25_vm1, %v304_v27  ;;  %v306_v35 = vadd.f32 %v244_v3, %v64_v21  ;;  %v376_v48 = vld [vmem:[#allocation2 + $0xa8] sm:$0xff] }
  0xf9   :  { %v536_v25 = vsel %vm468_vm13, %v440_v5, %v508_v14  ;;  %v550_v26 = vsel %vm482_vm14, %v454_v6, %v522_v15  ;;  %v320_v36 = vadd.f32 %v286_v4, %v78_v22  ;;  %v402_v40 = vmul.f32 %v794_v61, %v362_v33 }
  0xfa   :  { %564 = vst.msk [vmem:[%s1005_s5 + $0x28] sm:$0xff] %vm25_vm1, %v536_v25  ;;  %578 = vst.msk [vmem:[%s1005_s5 + $0x98] sm:$0xff] %vm25_vm1, %v550_v26  ;;  %v443_v41 = vadd.f32 %v782_v38, %v403_v29  ;;  %v405_v37 = vmul.f32 %v777_v32, %v242_v63  ;;  %v457_v42 = vadd.f32 %v782_v38, %v417_v34 }
  0xfb   :  { %347 = vst.msk [vmem:[#allocation2 + $0xb8] sm:$0xff] %vm25_vm1, %v318_v30  ;;  %v419_v43 = vmul.f32 %v777_v32, %v284_v0  ;;  %335 = vst.msk [vmem:[#allocation2 + $0x58] sm:$0xff] %vm25_vm1, %v306_v35  ;;  %v308_v39 = vadd.f32 %v250_v23, %v66_v31  ;;  %v442_v45 = vadd.f32 %v796_v62, %v402_v40 }
  0xfc   :  { %349 = vst.msk [vmem:[#allocation2 + $0xc8] sm:$0xff] %vm25_vm1, %v320_v36  ;;  %vm471_vm0 = vcmp.ge.f32.partialorder %v443_v41, 0.0  ;;  %v511_v46 = vmul.f32 %v785_v44, %v443_v41  ;;  %v445_v47 = vadd.f32 %v782_v38, %v405_v37  ;;  %vm485_vm2 = vcmp.ge.f32.partialorder %v457_v42, 0.0 }
  0xfd   :  { %v525_v49 = vmul.f32 %v785_v44, %v457_v42  ;;  %v459_v50 = vadd.f32 %v782_v38, %v419_v43  ;;  %v407_v51 = vmul.f32 %v777_v32, %v248_v17  ;;  %337 = vst.msk [vmem:[#allocation2 + $0x68] sm:$0xff] %vm25_vm1, %v308_v39  ;;  %vm470_vm3 = vcmp.ge.f32.partialorder %v442_v45, 0.0 }
  0xfe   :  { %v510_v52 = vmul.f32 %v810_v12, %v442_v45  ;;  %v416_v53 = vmul.f32 %v794_v61, %v376_v48  ;;  %v539_v54 = vsel %vm471_vm0, %v443_v41, %v511_v46  ;;  %vm473_vm4 = vcmp.ge.f32.partialorder %v445_v47, 0.0 }
  0xff   :  { %567 = vst [vmem:[%s1005_s5 + $0x40] sm:$0xff] %v539_v54  ;;  %v553_v56 = vsel %vm485_vm2, %v457_v42, %v525_v49  ;;  %v513_v57 = vmul.f32 %v785_v44, %v445_v47  ;;  %vm487_vm5 = vcmp.ge.f32.partialorder %v459_v50, 0.0  ;;  %v364_v60 = vld [vmem:[#allocation2 + $0x48] sm:$0xff]  ;;  %v527_v63 = vmul.f32 %v785_v44, %v459_v50 }
 0x100   :  { %v538_v58 = vsel %vm470_vm3, %v442_v45, %v510_v52  ;;  %v456_v59 = vadd.f32 %v796_v62, %v416_v53  ;;  %581 = vst [vmem:[%s1005_s5 + $0xb0] sm:$0xff] %v553_v56  ;;  %v447_v0 = vadd.f32 %v782_v38, %v407_v51  ;;  %v404_v1 = vmul.f32 %v794_v61, %v364_v60 }
 0x101   :  { %566 = vst.msk [vmem:[%s1005_s5 + $0x38] sm:$0xff] %vm25_vm1, %v538_v58  ;;  %v541_v3 = vsel %vm473_vm4, %v445_v47, %v513_v57  ;;  %v421_v4 = vmul.f32 %v777_v32, %v879_v18  ;;  %v322_v5 = vadd.f32 %v292_v24, %v80_v55  ;;  %v555_v8 = vsel %vm487_vm5, %v459_v50, %v527_v63 }
 0x102   :  { %v378_v2 = vld [vmem:[#allocation2 + $0xb8] sm:$0xff]  ;;  %vm484_vm6 = vcmp.ge.f32.partialorder %v456_v59, 0.0  ;;  %v524_v6 = vmul.f32 %v810_v12, %v456_v59  ;;  %569 = vst [vmem:[%s1005_s5 + $0x50] sm:$0xff] %v541_v3  ;;  %v444_v11 = vadd.f32 %v796_v62, %v404_v1  ;;  %583 = vst [vmem:[%s1005_s5 + $0xc0] sm:$0xff] %v555_v8  ;;  %vm475_vm7 = vcmp.ge.f32.partialorder %v447_v0, 0.0 }
 0x103   :  { %v418_v7 = vmul.f32 %v794_v61, %v378_v2  ;;  %v366_v9 = vld [vmem:[#allocation2 + $0x58] sm:$0xff]  ;;  %v380_v10 = vld [vmem:[#allocation2 + $0xc8] sm:$0xff]  ;;  %351 = vst.msk [vmem:[#allocation2 + $0xd8] sm:$0xff] %vm25_vm1, %v322_v5  ;;  %v515_v16 = vmul.f32 %v785_v44, %v447_v0  ;;  %v461_v17 = vadd.f32 %v782_v38, %v421_v4 }
 0x104   :  { %v406_v32 = vmul.f32 %v794_v61, %v366_v9  ;;  %v420_v13 = vmul.f32 %v794_v61, %v380_v10  ;;  %v552_v14 = vsel %vm484_vm6, %v456_v59, %v524_v6  ;;  %vm472_vm8 = vcmp.ge.f32.partialorder %v444_v11, 0.0  ;;  %v368_v21 = vld [vmem:[#allocation2 + $0x68] sm:$0xff] }
 0x105   :  { %v458_v15 = vadd.f32 %v796_v62, %v418_v7  ;;  %580 = vst.msk [vmem:[%s1005_s5 + $0xa8] sm:$0xff] %vm25_vm1, %v552_v14  ;;  %v512_v18 = vmul.f32 %v810_v12, %v444_v11  ;;  %v543_v23 = vsel %vm475_vm7, %v447_v0, %v515_v16  ;;  %vm489_vm10 = vcmp.ge.f32.partialorder %v461_v17, 0.0 }
 0x106   :  { %v446_v19 = vadd.f32 %v796_v62, %v406_v32  ;;  %v460_v20 = vadd.f32 %v796_v62, %v420_v13  ;;  %571 = vst [vmem:[%s1005_s5 + $0x60] sm:$0xff] %v543_v23  ;;  %v529_v27 = vmul.f32 %v785_v44, %v461_v17  ;;  %v408_v28 = vmul.f32 %v794_v61, %v368_v21 }
 0x107   :  { %vm486_vm9 = vcmp.ge.f32.partialorder %v458_v15, 0.0  ;;  %v526_v22 = vmul.f32 %v810_v12, %v458_v15  ;;  %v540_v24 = vsel %vm472_vm8, %v444_v11, %v512_v18 }
 0x108   :  { %vm474_vm11 = vcmp.ge.f32.partialorder %v446_v19, 0.0  ;;  %v514_v38 = vmul.f32 %v810_v12, %v446_v19  ;;  %vm488_vm12 = vcmp.ge.f32.partialorder %v460_v20, 0.0  ;;  %568 = vst.msk [vmem:[%s1005_s5 + $0x48] sm:$0xff] %vm25_vm1, %v540_v24  ;;  %v528_v26 = vmul.f32 %v810_v12, %v460_v20 }
 0x109   :  { %v554_v25 = vsel %vm486_vm9, %v458_v15, %v526_v22  ;;  %v557_v31 = vsel %vm489_vm10, %v461_v17, %v529_v27  ;;  %v448_v33 = vadd.f32 %v796_v62, %v408_v28 }
 0x10a   :  { %582 = vst.msk [vmem:[%s1005_s5 + $0xb8] sm:$0xff] %vm25_vm1, %v554_v25  ;;  %v542_v29 = vsel %vm474_vm11, %v446_v19, %v514_v38  ;;  %v556_v30 = vsel %vm488_vm12, %v460_v20, %v528_v26  ;;  %v382_v34 = vld [vmem:[#allocation2 + $0xd8] sm:$0xff]  ;;  %585 = vst [vmem:[%s1005_s5 + $0xd0] sm:$0xff] %v557_v31 }
 0x10b   :  { %570 = vst.msk [vmem:[%s1005_s5 + $0x58] sm:$0xff] %vm25_vm1, %v542_v29  ;;  %584 = vst.msk [vmem:[%s1005_s5 + $0xc8] sm:$0xff] %vm25_vm1, %v556_v30  ;;  %v422_v44 = vmul.f32 %v794_v61, %v382_v34  ;;  %vm476_vm13 = vcmp.ge.f32.partialorder %v448_v33, 0.0  ;;  %v516_v35 = vmul.f32 %v810_v12, %v448_v33 }
 0x10d   :  { %v462_v36 = vadd.f32 %v796_v62, %v422_v44  ;;  %v544_v40 = vsel %vm476_vm13, %v448_v33, %v516_v35 }
 0x10e   :  { %572 = vst.msk [vmem:[%s1005_s5 + $0x68] sm:$0xff] %vm25_vm1, %v544_v40 }
 0x10f   :  { %vm490_vm14 = vcmp.ge.f32.partialorder %v462_v36, 0.0  ;;  %v530_v41 = vmul.f32 %v810_v12, %v462_v36 }
 0x111   :  { %v558_v37 = vsel %vm490_vm14, %v462_v36, %v530_v41 }
 0x112   :  { %586 = vst.msk [vmem:[%s1005_s5 + $0xd8] sm:$0xff] %vm25_vm1, %v558_v37 }

</bundles_post_ra>
